<compile_context>
chip_gen: v7x
topology: tpu7x:2x2x1
jax: 0.10.0
libtpu: 0.0.40
codegen_flags: <defaults>
</compile_context>

<pallas_src>
import math

import jax
import jax.numpy as jnp
import numpy as np
from jax import lax
from jax.experimental import pallas as pl
from jax.experimental.pallas import tpu as pltpu


VMEM_LIMIT = 32 * 1024 * 1024  # explicit (v5e default scoped VMEM is only 16 MiB)


# --------------------------------- helpers ---------------------------------- #

def _pick_tile(n, max_tile):
    """Largest tile <= max_tile that evenly divides n (multiple of 8), else n itself."""
    if n <= max_tile:
        return n
    start = max_tile - (max_tile % 8)
    for t in range(start, 7, -8):
        if n % t == 0:
            return t
    return n  # pathological length: fall back to one full block


# --------------------------- head-major projection --------------------------- #

def _proj_heads_kernel(x_ref, w_ref, o_ref):
    # x block: (1, tn, Din), w block: (1, Din, D), out block: (1, 1, tn, D)
    o_ref[0, 0] = jnp.dot(
        x_ref[0], w_ref[0], preferred_element_type=jnp.float32
    ).astype(o_ref.dtype)


def project_heads(x, w_heads, *, tile_n=512):
    """x: (B, N, Din), w_heads: (HH, Din, D)  ->  (B, HH, N, D) head-major output."""
    b, n, din = x.shape
    hh, _, d = w_heads.shape
    tn = _pick_tile(n, tile_n)
    nt = n // tn
    return pl.pallas_call(
        _proj_heads_kernel,
        out_shape=jax.ShapeDtypeStruct((b, hh, n, d), x.dtype),
        grid=(b, nt, hh),
        in_specs=[
            pl.BlockSpec((1, tn, din), lambda bi, ti, hi: (bi, ti, 0)),
            pl.BlockSpec((1, din, d), lambda bi, ti, hi: (hi, 0, 0)),
        ],
        out_specs=pl.BlockSpec((1, 1, tn, d), lambda bi, ti, hi: (bi, hi, ti, 0)),
        compiler_params=pltpu.CompilerParams(
            # no accumulation across heads -> all axes parallel (megacore-friendly)
            dimension_semantics=("parallel", "parallel", "parallel"),
            vmem_limit_bytes=VMEM_LIMIT,
        ),
    )(x, w_heads)


# -------------- fused flash attention + output projection (to_out) ----------- #

def _fused_attn_single_kv_kernel(q_ref, k_ref, v_ref, w_ref, b_ref, o_ref, out_sc):
    # Fast path: whole KV fits one tile -> plain softmax, no online-softmax machinery.
    hi = pl.program_id(2)

    @pl.when(hi == 0)
    def _():
        out_sc[...] = jnp.zeros(out_sc.shape, dtype=out_sc.dtype)

    q = q_ref[0, 0]          # (tq, d)   -- softmax scale folded into w_q
    k = k_ref[0, 0]          # (m, d)
    v = v_ref[0, 0]          # (m, d)

    s = lax.dot_general(
        q, k, (((1,), (1,)), ((), ())), preferred_element_type=jnp.float32
    )                         # (tq, m) fp32
    m = jnp.max(s, axis=-1, keepdims=True)
    p = jnp.exp(s - m)
    l = jnp.sum(p, axis=-1, keepdims=True)
    o_head = jnp.dot(p.astype(v.dtype), v, preferred_element_type=jnp.float32)
    o_head = o_head * pl.reciprocal(l, approx=False)

    # fused to_out: per-head (tq, d) @ (d, Dq), accumulated across heads
    out_sc[...] += jnp.dot(o_head.astype(w_ref.dtype), w_ref[0],
                           preferred_element_type=jnp.float32)

    @pl.when(hi == pl.num_programs(2) - 1)
    def _():
        o_ref[0] = (out_sc[...] + b_ref[...].astype(jnp.float32)).astype(o_ref.dtype)


def _fused_attn_kernel(q_ref, k_ref, v_ref, w_ref, b_ref, o_ref,
                       m_sc, l_sc, acc_sc, out_sc):
    hi = pl.program_id(2)
    ki = pl.program_id(3)
    nh = pl.num_programs(2)
    nk = pl.num_programs(3)

    @pl.when(jnp.logical_and(hi == 0, ki == 0))
    def _():
        out_sc[...] = jnp.zeros(out_sc.shape, dtype=out_sc.dtype)

    @pl.when(ki == 0)
    def _():
        m_sc[...] = jnp.full(m_sc.shape, -jnp.inf, dtype=m_sc.dtype)
        l_sc[...] = jnp.zeros(l_sc.shape, dtype=l_sc.dtype)
        acc_sc[...] = jnp.zeros(acc_sc.shape, dtype=acc_sc.dtype)

    q = q_ref[0, 0]          # (tq, d)
    k = k_ref[0, 0]          # (tkv, d)
    v = v_ref[0, 0]          # (tkv, d)

    s = lax.dot_general(
        q, k, (((1,), (1,)), ((), ())), preferred_element_type=jnp.float32
    )                         # (tq, tkv) fp32
    m_prev = m_sc[...]
    m_new = jnp.maximum(m_prev, jnp.max(s, axis=-1, keepdims=True))
    alpha = jnp.exp(m_prev - m_new)
    p = jnp.exp(s - m_new)
    l_sc[...] = alpha * l_sc[...] + jnp.sum(p, axis=-1, keepdims=True)
    acc_sc[...] = alpha * acc_sc[...] + jnp.dot(
        p.astype(v.dtype), v, preferred_element_type=jnp.float32
    )
    m_sc[...] = m_new

    @pl.when(ki == nk - 1)
    def _():
        o_head = acc_sc[...] * pl.reciprocal(l_sc[...], approx=False)
        out_sc[...] += jnp.dot(o_head.astype(w_ref.dtype), w_ref[0],
                               preferred_element_type=jnp.float32)

    @pl.when(jnp.logical_and(hi == nh - 1, ki == nk - 1))
    def _():
        o_ref[0] = (out_sc[...] + b_ref[...].astype(jnp.float32)).astype(o_ref.dtype)


def fused_attention_out(q_arr, kv_arr, w_out_heads, bias, *, heads, dim_head,
                        q_off, k_off, v_off, tile_q=512, tile_kv=1024):
    """Flash attention with the to_out projection fused into the finalize.

    q_arr: (B, >=H, N, D), kv_arr: (B, >=?, M, D) (may be the same array);
    heads selected via BlockSpec head offsets (q_off / k_off / v_off).
    w_out_heads: (H, D, Dq), bias: (Dq,).  Returns (B, N, Dq) directly
    (the (B, H, N, D) attention intermediate never touches HBM).
    """
    b = q_arr.shape[0]
    n = q_arr.shape[2]
    m = kv_arr.shape[2]
    d = dim_head
    dq = w_out_heads.shape[-1]

    tq = _pick_tile(n, tile_q)
    tkv = _pick_tile(m, tile_kv)
    nqt = n // tq
    nkt = m // tkv

    bias2d = bias.reshape(1, dq)
    itemsize = jnp.dtype(q_arr.dtype).itemsize
    cost = pl.CostEstimate(
        flops=4 * b * heads * n * m * d + 2 * b * heads * n * d * dq,
        transcendentals=b * heads * n * m,
        bytes_accessed=itemsize * (b * heads * n * d            # q (read once)
                                   + 2 * b * heads * m * d * nqt  # k/v re-streamed / q-tile
                                   + b * n * dq                    # fused output
                                   + heads * d * dq + dq),
    )

    if nkt == 1:
        # short-context fast path (e.g. CLIP seq length 77)
        return pl.pallas_call(
            _fused_attn_single_kv_kernel,
            out_shape=jax.ShapeDtypeStruct((b, n, dq), q_arr.dtype),
            grid=(b, nqt, heads),
            in_specs=[
                pl.BlockSpec((1, 1, tq, d), lambda bi, qi, hi: (bi, hi + q_off, qi, 0)),
                pl.BlockSpec((1, 1, tkv, d), lambda bi, qi, hi: (bi, hi + k_off, 0, 0)),
                pl.BlockSpec((1, 1, tkv, d), lambda bi, qi, hi: (bi, hi + v_off, 0, 0)),
                pl.BlockSpec((1, d, dq), lambda bi, qi, hi: (hi, 0, 0)),
                pl.BlockSpec((1, dq), lambda bi, qi, hi: (0, 0)),
            ],
            out_specs=pl.BlockSpec((1, tq, dq), lambda bi, qi, hi: (bi, qi, 0)),
            scratch_shapes=[pltpu.VMEM((tq, dq), jnp.float32)],
            compiler_params=pltpu.CompilerParams(
                dimension_semantics=("parallel", "parallel", "arbitrary"),
                vmem_limit_bytes=VMEM_LIMIT,
            ),
            cost_estimate=cost,
        )(q_arr, kv_arr, kv_arr, w_out_heads, bias2d)

    return pl.pallas_call(
        _fused_attn_kernel,
        out_shape=jax.ShapeDtypeStruct((b, n, dq), q_arr.dtype),
        grid=(b, nqt, heads, nkt),
        in_specs=[
            pl.BlockSpec((1, 1, tq, d), lambda bi, qi, hi, ki: (bi, hi + q_off, qi, 0)),
            pl.BlockSpec((1, 1, tkv, d), lambda bi, qi, hi, ki: (bi, hi + k_off, ki, 0)),
            pl.BlockSpec((1, 1, tkv, d), lambda bi, qi, hi, ki: (bi, hi + v_off, ki, 0)),
            pl.BlockSpec((1, d, dq), lambda bi, qi, hi, ki: (hi, 0, 0)),
            pl.BlockSpec((1, dq), lambda bi, qi, hi, ki: (0, 0)),
        ],
        out_specs=pl.BlockSpec((1, tq, dq), lambda bi, qi, hi, ki: (bi, qi, 0)),
        scratch_shapes=[
            pltpu.VMEM((tq, 1), jnp.float32),   # running max
            pltpu.VMEM((tq, 1), jnp.float32),   # running sum
            pltpu.VMEM((tq, d), jnp.float32),   # per-head output accumulator
            pltpu.VMEM((tq, dq), jnp.float32),  # fused to_out accumulator (over heads)
        ],
        compiler_params=pltpu.CompilerParams(
            dimension_semantics=("parallel", "parallel", "arbitrary", "arbitrary"),
            vmem_limit_bytes=VMEM_LIMIT,
        ),
        cost_estimate=cost,
    )(q_arr, kv_arr, kv_arr, w_out_heads, bias2d)


# ------------------------------- module wrapper ------------------------------ #

class MemoryEfficientCrossAttentionPallas:
    def __init__(self, query_dim, context_dim=None, heads=8, dim_head=64,
                 dropout=0.0, key=None, dtype=jnp.float32,
                 proj_tile_n=512, attn_tile_q=512, attn_tile_kv=1024):
        inner_dim = dim_head * heads
        context_dim = query_dim if context_dim is None else context_dim
        self.query_dim = query_dim
        self.context_dim = context_dim
        self.heads = heads
        self.dim_head = dim_head
        self.inner_dim = inner_dim
        self.scale = dim_head ** (-0.5)
        self.dropout = dropout  # identity at inference
        self.proj_tile_n = proj_tile_n
        self.attn_tile_q = attn_tile_q
        self.attn_tile_kv = attn_tile_kv

        key = jax.random.PRNGKey(0) if key is None else key
        kq, kk, kv, kow, kob = jax.random.split(key, 5)

        def init(k, fan_in, fan_out):
            bound = 1.0 / math.sqrt(fan_in)
            # stored pre-transposed: (Din, Dout), i.e. torch_weight.T
            return jax.random.uniform(k, (fan_in, fan_out), dtype, -bound, bound)

        # logical (PyTorch-equivalent) weights, used by the pure-JAX reference
        self.w_q_t = init(kq, query_dim, inner_dim)       # to_q.weight.T   (no bias)
        self.w_k_t = init(kk, context_dim, inner_dim)     # to_k.weight.T   (no bias)
        self.w_v_t = init(kv, context_dim, inner_dim)     # to_v.weight.T   (no bias)
        self.w_out_t = init(kow, inner_dim, query_dim)    # to_out[0].weight.T
        b_bound = 1.0 / math.sqrt(inner_dim)
        self.b_out = jax.random.uniform(kob, (query_dim,), dtype, -b_bound, b_bound)

        h, d = heads, dim_head

        def to_heads(w_t):  # (Din, h*d) -> (h, Din, d)
            din = w_t.shape[0]
            return jnp.transpose(w_t.reshape(din, h, d), (1, 0, 2))

        # kernel-ready layouts: head-major weights; softmax scale folded into to_q.
        self.w_q_heads = to_heads(self.w_q_t * self.scale)            # (h, Dq, d)
        self.w_kv_heads = jnp.concatenate(
            [to_heads(self.w_k_t), to_heads(self.w_v_t)], axis=0)     # (2h, Dc, d)
        if context_dim == query_dim:
            self.w_qkv_heads = jnp.concatenate(
                [self.w_q_heads, self.w_kv_heads], axis=0)            # (3h, Dq, d)
        else:
            self.w_qkv_heads = None
        self.w_out_heads = self.w_out_t.reshape(h, d, query_dim)      # (h, d, Dq)

    def __call__(self, x, context=None, mask=None):
        if mask is not None:
            # Matches the PyTorch module, which raises NotImplementedError for mask.
            raise NotImplementedError("mask is not supported")
        h, d = self.heads, self.dim_head

        if context is None and self.w_qkv_heads is not None:
            # Self-attention: single fused q/k/v projection -> one pass over x,
            # heads written head-major; attention indexes q/k/v heads in-place.
            qkv = project_heads(x, self.w_qkv_heads, tile_n=self.proj_tile_n)  # (B,3h,N,d)
            q_arr, kv_arr = qkv, qkv
            q_off, k_off, v_off = 0, h, 2 * h
        else:
            ctx = x if context is None else context
            q_arr = project_heads(x, self.w_q_heads, tile_n=self.proj_tile_n)     # (B,h,N,d)
            kv_arr = project_heads(ctx, self.w_kv_heads, tile_n=self.proj_tile_n)  # (B,2h,M,d)
            q_off, k_off, v_off = 0, 0, h

        # attention + to_out fused into one kernel -> (B, N, query_dim)
        return fused_attention_out(
            q_arr, kv_arr, self.w_out_heads, self.b_out,
            heads=h, dim_head=d, q_off=q_off, k_off=k_off, v_off=v_off,
            tile_q=self.attn_tile_q, tile_kv=self.attn_tile_kv)


# ----------------------------- pure-JAX reference ---------------------------- #

def reference(mod, x, context=None):
    b, n, _ = x.shape
    ctx = x if context is None else context
    h, d = mod.heads, mod.dim_head
    q = (x @ mod.w_q_t).reshape(b, n, h, d).transpose(0, 2, 1, 3)
    k = (ctx @ mod.w_k_t).reshape(b, -1, h, d).transpose(0, 2, 1, 3)
    v = (ctx @ mod.w_v_t).reshape(b, -1, h, d).transpose(0, 2, 1, 3)
    sim = jnp.einsum('bhid,bhjd->bhij', q, k) * mod.scale
    attn = jax.nn.softmax(sim, axis=-1)
    out = jnp.einsum('bhij,bhjd->bhid', attn, v)
    out = out.transpose(0, 2, 1, 3).reshape(b, n, h * d)
    return out @ mod.w_out_t + mod.b_out


# ------------------------------------ main ----------------------------------- #

if __name__ == "__main__":
    key = jax.random.PRNGKey(0)
    kx, kc, kp1, kp2, kx2, kc2, kp3 = jax.random.split(key, 7)

    B, NQ, NK = 2, 8, 6
    query_dim, context_dim, heads, dim_head = 32, 48, 2, 16

    x = jax.random.normal(kx, (B, NQ, query_dim), jnp.float32)
    ctx = jax.random.normal(kc, (B, NK, context_dim), jnp.float32)

    # 1) cross-attention path (context given, nkt==1 fast path)
    attn_cross = MemoryEfficientCrossAttentionPallas(
        query_dim, context_dim, heads, dim_head, key=kp1)
    out_cross = attn_cross(x, ctx)
    jax.block_until_ready(out_cross)
    ref_cross = reference(attn_cross, x, ctx)
    np.testing.assert_allclose(np.asarray(out_cross), np.asarray(ref_cross),
                               rtol=2e-3, atol=2e-3)

    # 2) self-attention path (context=None -> fused qkv projection, nkt==1 fast path)
    attn_self = MemoryEfficientCrossAttentionPallas(
        query_dim, None, heads, dim_head, key=kp2)
    out_self = attn_self(x)
    jax.block_until_ready(out_self)
    ref_self = reference(attn_self, x)
    np.testing.assert_allclose(np.asarray(out_self), np.asarray(ref_self),
                               rtol=2e-3, atol=2e-3)

    # 3) longer sequences with small tiles to exercise the online-softmax
    #    (multi KV-tile) kernel and the fused head-reduction accumulator.
    NQ2, NK2 = 64, 48
    x2 = jax.random.normal(kx2, (B, NQ2, query_dim), jnp.float32)
    ctx2 = jax.random.normal(kc2, (B, NK2, context_dim), jnp.float32)
    attn_multi = MemoryEfficientCrossAttentionPallas(
        query_dim, context_dim, heads, dim_head, key=kp3,
        attn_tile_q=32, attn_tile_kv=16)
    out_multi = attn_multi(x2, ctx2)
    jax.block_until_ready(out_multi)
    ref_multi = reference(attn_multi, x2, ctx2)
    np.testing.assert_allclose(np.asarray(out_multi), np.asarray(ref_multi),
                               rtol=2e-3, atol=2e-3)

    print("KERNEL_OK")
</pallas_src>

<mosaic_0001>
module attributes {stable_mosaic.version = 11 : i64} {
  func.func @_proj_heads_kernel(%arg0: i32, %arg1: i32, %arg2: i32, %arg3: memref<1x8x32xf32, #tpu.memory_space<vmem>>, %arg4: memref<1x32x16xf32, #tpu.memory_space<vmem>>, %arg5: memref<1x1x8x16xf32, #tpu.memory_space<vmem>>) attributes {dimension_semantics = [#tpu.dimension_semantics<parallel>, #tpu.dimension_semantics<parallel>, #tpu.dimension_semantics<parallel>], iteration_bounds = array<i64: 2, 1, 2>, scalar_prefetch = 0 : i64, scratch_operands = 0 : i64, tpu.core_type = #tpu.core_type<tc>, window_params = [{transform_indices = @transform_0, window_bounds = array<i64: 1, 8, 32>}, {transform_indices = @transform_1, window_bounds = array<i64: 1, 32, 16>}, {transform_indices = @transform_2, window_bounds = array<i64: 1, 1, 8, 16>}]} {
    %c0 = arith.constant 0 : index
    %c0_0 = arith.constant 0 : index
    %c0_1 = arith.constant 0 : index
    %0 = vector.load %arg3[%c0, %c0_0, %c0_1] : memref<1x8x32xf32, #tpu.memory_space<vmem>>, vector<1x8x32xf32>
    %1 = vector.shape_cast %0 : vector<1x8x32xf32> to vector<8x32xf32>
    %c0_2 = arith.constant 0 : index
    %c0_3 = arith.constant 0 : index
    %c0_4 = arith.constant 0 : index
    %2 = vector.load %arg4[%c0_2, %c0_3, %c0_4] : memref<1x32x16xf32, #tpu.memory_space<vmem>>, vector<1x32x16xf32>
    %3 = vector.shape_cast %2 : vector<1x32x16xf32> to vector<32x16xf32>
    %cst = arith.constant dense<0.000000e+00> : vector<8x16xf32>
    %4 = tpu.matmul %1, %3, %cst {dimension_numbers = #tpu.dot_dimension_numbers<[1], [0], [0], [1], [0, 0, 1, 1], [], []>} : vector<8x32xf32>, vector<32x16xf32>, vector<8x16xf32> -> vector<8x16xf32>
    %c0_5 = arith.constant 0 : index
    %c0_6 = arith.constant 0 : index
    %c0_7 = arith.constant 0 : index
    %c0_8 = arith.constant 0 : index
    %5 = vector.load %arg5[%c0_5, %c0_6, %c0_7, %c0_8] : memref<1x1x8x16xf32, #tpu.memory_space<vmem>>, vector<1x1x8x16xf32>
    %6 = vector.shape_cast %5 : vector<1x1x8x16xf32> to vector<8x16xf32>
    %7 = vector.shape_cast %4 : vector<8x16xf32> to vector<1x1x8x16xf32>
    tpu.vector_store %arg5[%c0_5, %c0_6, %c0_7, %c0_8], %7 {strides = array<i32>} : memref<1x1x8x16xf32, #tpu.memory_space<vmem>>, vector<1x1x8x16xf32>,
    return
  }
  func.func @transform_0(%arg0: i32, %arg1: i32, %arg2: i32) -> (i32, i32, i32) {
    %c0_i32 = arith.constant 0 : i32
    %c0_i32_0 = arith.constant 0 : i32
    return %arg0, %arg1, %c0_i32 : i32, i32, i32
  }
  func.func @transform_1(%arg0: i32, %arg1: i32, %arg2: i32) -> (i32, i32, i32) {
    %c0_i32 = arith.constant 0 : i32
    %c0_i32_0 = arith.constant 0 : i32
    %c0_i32_1 = arith.constant 0 : i32
    return %arg2, %c0_i32, %c0_i32_0 : i32, i32, i32
  }
  func.func @transform_2(%arg0: i32, %arg1: i32, %arg2: i32) -> (i32, i32, i32, i32) {
    %c0_i32 = arith.constant 0 : i32
    %c0_i32_0 = arith.constant 0 : i32
    return %arg0, %arg2, %arg1, %c0_i32 : i32, i32, i32, i32
  }
}

</mosaic_0001>

<bundles_post_ra>
// kernel: tpu_custom_call.1
= control target key start
LH: loop header
LB: loop body
LE: loop exit
PB: predicated region body
PF: predicated region fallthrough
CT: control target
= control target key end

     0   :  { %7 = vsyncpa [#allocation3], 0  ;;  %s749_s0 = inlined_call_operand.vmem [shape: f32[2,8,32], index: 0, kind: input, shape index: {}]   ;;  %s750_s1 = inlined_call_operand.vmem [shape: f32[2,32,16], index: 1, kind: input, shape index: {}]   ;;  %s751_s2 = inlined_call_operand.hbm [shape: f32[2,2,8,16], index: 2, kind: output, shape index: {}]  }
   0x1   :  { %9 = vsyncpa [#allocation3 + $0x1], 0  ;;  %s609_s9 = smov 0   ;;  %s611_s10 = smov 0  }
   0x2   :  { %s613_s11 = smov 0   ;;  %s615_s12 = smov 0  }
   0x3   :  { %s617_s13 = smov 0   ;;  %s619_s14 = smov 0  }
   0x4   :  { %s621_s15 = smov 0   ;;  %s623_s16 = smov 0  }
   0x5 LB: > { %s382_s17 = sadd.s32 4294967295, %s588_s16   ;;  %s383_s18 = sadd.s32 4294967294, %s588_s16   ;;  %s588_s16 = sphi %s623_s16, %s15_s16   ;;  %s584_s15 = sphi %s621_s15, %s760_s15   ;;  %s580_s14 = sphi %s619_s14, %s759_s14   ;;  %s576_s13 = sphi %s617_s13, %s758_s13   ;;  %s572_s12 = sphi %s615_s12, %s757_s12   ;;  %s568_s11 = sphi %s613_s11, %s756_s11   ;;  %s564_s10 = sphi %s611_s10, %s755_s10   ;;  %s560_s9 = sphi %s609_s9, %s754_s9  }
   0x6   : > { %s27_s19 = sadd.s32 1, %s580_s14  ;;  %s34_s20 = sadd.s32 1, %s584_s15 }
   0x7   : > { %p28_p0 = scmp.ge.s32.totalorder %s27_s19, 2  ;;  %p109_p1 = scmp.ne.s32.totalorder %s568_s11, %s564_s10 }
   0x8   : > { %p110_p2 = scmp.eq.s32.totalorder %s382_s17, 3  ;;  %p115_p5 = scmp.ne.s32.totalorder %s564_s10, %s560_s9 }
   0x9   : > { %s762_s19 = smov (%p28_p0, %s27_s19), 0  ;;  %s764_s20 = smov (!%p28_p0, %s34_s20), %s584_s15 }
   0xa   : > { %s93_s21 = ssub.s32 %s580_s14, %s762_s19  ;;  %p660_p3 = por %p110_p2, %p109_p1 }
   0xb   : > { %p36_p4 = scmp.ge.s32.totalorder %s764_s20, 2  ;;  %p116_p6 = scmp.eq.s32.totalorder %s383_s18, 3 }
   0xc   : > { %p386_p7 = scmp.ge.s32.totalorder %s588_s16, 1  ;;  %p152_p9 = scmp.lt.s32.totalorder %s588_s16, 5 }
   0xd   : > { %s766_s20 = smov (%p36_p4, %s764_s20), 0  ;;  %p669_p8 = por %p116_p6, %p115_p5 }
   0xe   : > { %s92_s24 = ssub.s32 %s584_s15, %s766_s20  ;;  %s99_s25 = sadd.s32 1, %s568_s11 }
   0xf   : > { %s94_s26 = sor.u32 %s93_s21, %s92_s24  ;;  %p153_p10 = pnand %p386_p7, %p152_p9 }
  0x10   : > { %p97_p11 = scmp.eq.s32.totalorder %s94_s26, 0  ;;  %p188_p12 = scmp.lt.s32.totalorder (!%p153_p10), %s572_s12, 1  ;;  %v590_v0 = vmov (!%p153_p10), 0.0|0.0   ;;  %vm591_vm0 = vmmov (!%p153_p10), 0   ;;  %v592_v1 = vmov (!%p153_p10), 0.0   ;;  %vm198_vm1 = vcmask (!%p153_p10), 261120  }
  0x11   : > { %156 = sbr.rel (%p153_p10) target bundleno = 264 (0x108), region = 28  ;;  %p181_p13 = scmp.lt.s32.totalorder (!%p153_p10), %s576_s13, 1  ;;  %414 = vmatprep.subr.bf16.mxu0 (!%p153_p10), %v590_v0  ;;  %411 = vmatprep.mubr.msk.f32.mxu0 (!%p153_p10), %vm591_vm0, %v592_v1  ;;  %vm272_vm2 = vcmask (!%p153_p10), 130048  }
  0x12   : > { %s678_s27 = scalar_select %p97_p11, %s568_s11, %s99_s25  }
  0x13   : > { %s178_s18 = sand.u32 (!%p153_p10), 1, %s564_s10   ;;  %s393_s24 = sshll.u32 (!%p153_p10), %s576_s13, 1 }
  0x14   : > { %s387_s21 = sshll.u32 (!%p153_p10), %s178_s18, 3  ;;  %s287_s25 = sadd.s32 (!%p153_p10), %s572_s12, %s393_s24 }
  0x15   : > { %s394_s26 = sshll.u32 (!%p153_p10), %s287_s25, 7 }
  0x16   : > { %s696_s4 = scalar_lea.hbm (!%p153_p10), %s751_s2, %s394_s26 }
  0x18   : > { %s189_s28 = scalar_select %p188_p12, %s572_s12, 1 }
  0x19   : > { %s182_s29 = scalar_select %p181_p13, %s576_s13, 1 }
  0x1a   : > { %s397_s30 = sshll.u32 %s189_s28, 5  ;;  %s180_s28 = scalar_lea.vmem [#allocation2], %s387_s21 }
  0x1b   : > { %s192_s5 = scalar_lea.vmem %s750_s1, %s397_s30  ;;  %s388_s6 = sshll.u32 %s182_s29, 3 }
  0x1c   : > { %v194_v2 = vld [vmem:[%s192_s5] sm:$0xff]  ;;  %v195_v3 = vld [vmem:[%s192_s5 + $0x8] sm:$0xff]  ;;  %v196_v4 = vld [vmem:[%s192_s5 + $0x10] sm:$0xff]  ;;  %s187_s17 = scalar_lea.vmem %s749_s0, %s388_s6  ;;  %s291_s30 = sshll.u32 %s180_s28, 4  ;;  %s698_s30 = int_to_ptr.vmem [resolvable:$true] %s291_s30 }
  0x1d   : > { %v415_v5 = vpack.c.bf16 %v195_v3, %v194_v2  ;;  %v197_v6 = vld [vmem:[%s192_s5 + $0x18] sm:$0xff]  ;;  %v193_v8 = vld [vmem:[%s187_s17] sm:$0xff]  ;;  %s275_s5 = scalar_lea.sflag [#allocation3], %s178_s18  ;;  %s494_s13 = scalar_lea.vmem %s698_s30, 128 }
  0x1e   : > { %v418_v7 = vpack.c.bf16 %v197_v6, %v196_v4  ;;  %p495_p0 = scmp.ne.s32.totalorder %s698_s30, %s494_s13  ;;  %s593_s12 = smov [#allocation2]  }
  0x1f   : > { %416 = vmatpush3.bf16.msra.mxu0 %v415_v5  ;;  %s498_s6 = sshll.u32 %s593_s12, 4  ;;  %s499_s6 = int_to_ptr.vmem [resolvable:$false] %s498_s6 }
  0x20   : > { %417 = vmatprep.subr.bf16.mxu0 %v590_v0  ;;  %p496_p1 = pnand %p495_p0, %p660_p3  ;;  %s500_s7 = scalar_lea.vmem %s499_s6, 256 }
  0x21   : > { %p501_p4 = scmp.lt.s32.totalorder %s698_s30, %s499_s6  ;;  %p502_p5 = scmp.lt.s32.totalorder %s500_s7, %s494_s13 }
  0x22   : > { %p497_p2 = pneg %p496_p1 }
  0x23   : > { %419 = vmatpush3.bf16.msra.mxu0 %v418_v7  ;;  %p503_p6 = por %p502_p5, %p501_p4 }
  0x25   : > { %p504_p7 = pnand %p503_p6, %p497_p2 }
  0x26   : > { %412 = vmatmul.mubr.msk.f32.vlgmr.msra.gmra.mrb[0].mxu0 %vm198_vm1, %v193_v8 }
  0xf9   : > { %v268_v9 = vpop.f32.mrb[0].mxu0 }
  0xfa   : > { %273 = vst.msk [vmem:[%s180_s28] sm:$0xff] %vm272_vm2, %v268_v9  ;;  %v413_v10 = vpop.f32.mrb[1].mxu0 }
  0xfb   : > { %507 = shalt.err (!%p504_p7)
}
  0xfc   : > { %s508_s8 = scalar_lea.hbm %s696_s4, 128  ;;  %s512_s21 = scalar_lea.hbm %s751_s2, 512 }
  0xfd   : > { %p509_p9 = scmp.ne.s32.totalorder %s696_s4, %s508_s8  ;;  %p513_p12 = scmp.lt.u32.totalorder %s696_s4, %s751_s2 }
  0xfe   : > { %p514_p13 = scmp.lt.u32.totalorder %s512_s21, %s508_s8  ;;  %p516_p1 = scmp.lt.u32.totalorder %s508_s8, %s696_s4 }
  0xff   : > { %p510_p10 = pnand %p509_p9, %p660_p3 }
 0x100   : > { %p515_p0 = por %p514_p13, %p513_p12 }
 0x101   : > { %p511_p11 = pneg %p510_p10 }
 0x102   : > { %p517_p2 = por %p516_p1, %p515_p0 }
 0x104   : > { %p518_p4 = pnand %p517_p2, %p511_p11 }
 0x106   : > { %521 = shalt.err (!%p518_p4)
}
 0x107   : > { %420 = dma.vmem_to_hbm [thread:$0]  (%p660_p3), %s698_s30, 128, %s696_s4, %s275_s5  }
 0x108 PF: > { %p426_p5 = scmp.ge.s32.totalorder %s588_s16, 2  ;;  %s303_s26 = sand.u32 1, %s560_s9  }
 0x109   : > { %s304_s28 = scalar_lea.sflag [#allocation3], %s303_s26 }
 0x10a   : > { %p423_p6 = pnand %p426_p5, %p669_p8 }
 0x10c   : > { %555 = dma.done.wait (!%p423_p6), %s304_s28, 128  }
 0x10d   : > { %557 = vsyncadd (!%p423_p6), %s304_s28, 4294967168  ;;  %s15_s16 = sadd.s32 1, %s588_s16   ;;  %s754_s9 = smov %s564_s10 }
 0x10e   : > { %p12_p7 = scmp.ge.s32.totalorder %s15_s16, 6   ;;  %s755_s10 = smov %s568_s11 }
 0x10f   : > { %s756_s11 = smov %s678_s27  ;;  %s757_s12 = smov %s580_s14 }
 0x110   : > { %s758_s13 = smov %s584_s15  ;;  %s759_s14 = smov %s762_s19 }
 0x111   : > { %s760_s15 = smov %s766_s20  ;;  %14 = sbr.rel (!%p12_p7) target bundleno = 5 (0x5), region = 66 }
 0x118   :  { %309 = vsyncpa [#allocation3], 1 }
 0x119   :  { %311 = vsyncpa [#allocation3 + $0x1], 1 }

</bundles_post_ra>
